<compile_context>
chip_gen: v6e
topology: v6e:2x2x1
jax: 0.10.0
libtpu: 0.0.40
codegen_flags: <defaults>
</compile_context>

<pallas_src>
import jax
import jax.numpy as jnp
from jax.experimental import pallas as pl
from jax.experimental.pallas import tpu as pltpu


def _round_up(x: int, n: int) -> int:
    return -(-x // n) * n


def _angle_resnet_kernel(a_ref, w1_ref, w2_ref, b_ref, o_ref):
    # a -> relu -> linear1 -> relu -> linear2 -> + a   (per row tile)
    a = a_ref[...]                                            # (tm, c_eff)
    x = jnp.maximum(a, jnp.zeros((), dtype=a.dtype))          # ReLU (VPU)
    x = x.astype(w1_ref.dtype)

    # linear_1 on the MXU, f32 accumulation; bias added in the accumulator.
    h = jnp.dot(x, w1_ref[...], preferred_element_type=jnp.float32)
    h = jnp.maximum(h + b_ref[0:1, :], 0.0)                   # +b1, ReLU (f32)

    # linear_2: cast to the weight dtype (bf16 for bf16 models) for MXU rate.
    y = jnp.dot(h.astype(w2_ref.dtype), w2_ref[...],
                preferred_element_type=jnp.float32)
    y = y + b_ref[1:2, :]                                     # +b2

    o_ref[...] = (a.astype(jnp.float32) + y).astype(o_ref.dtype)   # residual


def angle_resnet_layer(a, w1, b1, w2, b2, *, vmem_budget_bytes=40 * 1024 * 1024):
    """
    Args:
      a:  (*, N_res, c) input embedding
      w1: (c, c) weight of linear_1 (PyTorch convention: out x in)
      b1: (c,)   bias of linear_1
      w2: (c, c) weight of linear_2
      b2: (c,)   bias of linear_2
    Returns:
      (*, N_res, c) output, same dtype as a.
    """
    orig_shape = a.shape
    c = orig_shape[-1]
    a2d = a.reshape(-1, c)
    m = a2d.shape[0]

    # --- lane-dense folding for small c (unconditional; pad rows if needed) --
    fold = 1
    if c < 128 and 128 % c == 0:
        fold = 128 // c
    c_eff = c * fold

    # Pad M so (a) folding is exact and (b) the folded row axis is a multiple
    # of 16 -> always >= 2 grid steps of multiple-of-8 row blocks.
    m_pad = _round_up(max(m, 1), fold * 16)
    if m_pad != m:
        a2d = jnp.pad(a2d, ((0, m_pad - m), (0, 0)))
    m_eff = m_pad // fold
    a2d = a2d.reshape(m_eff, c_eff)

    # --- weights / biases: pre-transpose, block-diagonalize when folding -----
    dot_dtype = jnp.bfloat16 if a.dtype == jnp.bfloat16 else jnp.float32
    w1t, w2t = w1.T, w2.T
    b1f, b2f = b1, b2
    if fold > 1:
        eye = jnp.eye(fold, dtype=w1.dtype)
        w1t = jnp.kron(eye, w1t)            # block-diagonal (c_eff, c_eff)
        w2t = jnp.kron(eye, w2t)
        b1f = jnp.tile(b1, fold)
        b2f = jnp.tile(b2, fold)
    w1t = w1t.astype(dot_dtype)
    w2t = w2t.astype(dot_dtype)
    b_packed = jnp.stack([b1f, b2f]).astype(jnp.float32)      # (2, c_eff)

    # --- derive the row tile from the VMEM budget ----------------------------
    act_bytes = jnp.dtype(a.dtype).itemsize
    dot_bytes = jnp.dtype(dot_dtype).itemsize
    # Resident operands (Pallas double-buffers even constant-index blocks).
    resident = 2 * (2 * c_eff * c_eff * dot_bytes) + 2 * (2 * c_eff * 4)
    # Per-row: 2 double-buffered input tiles + 2 output tiles (act dtype)
    # + ~3 live f32 intermediates (h / y / residual) of compiler scratch.
    per_row = c_eff * (4 * act_bytes + 3 * 4)
    max_tm = max(8, (vmem_budget_bytes - resident) // per_row)
    tm_cap = 8192 if act_bytes <= 2 else 4096       # bf16 vs f32 activations
    tm = max(8, (min(max_tm, tm_cap) // 8) * 8)

    # --- grid: >= 2 blocks, even count when possible (v7x megacore balance) --
    n_blocks = max(2, pl.cdiv(m_eff, tm))
    if n_blocks % 2:
        n_blocks += 1
    block_m = _round_up(-(-m_eff // n_blocks), 8)   # multiple of 8, <= tm
    grid = (pl.cdiv(m_eff, block_m),)

    cost = pl.CostEstimate(
        flops=4 * m_eff * c_eff * c_eff,            # two (m,c_eff)x(c_eff,c_eff) matmuls
        transcendentals=0,
        bytes_accessed=(2 * m_eff * c_eff * act_bytes
                        + 2 * c_eff * c_eff * dot_bytes
                        + 2 * c_eff * 4),
    )

    out = pl.pallas_call(
        _angle_resnet_kernel,
        out_shape=jax.ShapeDtypeStruct((m_eff, c_eff), a.dtype),
        grid_spec=pltpu.PrefetchScalarGridSpec(
            num_scalar_prefetch=0,
            grid=grid,
            in_specs=[
                pl.BlockSpec((block_m, c_eff), lambda i: (i, 0)),   # activations
                pl.BlockSpec((c_eff, c_eff), lambda i: (0, 0)),     # W1^T (resident)
                pl.BlockSpec((c_eff, c_eff), lambda i: (0, 0)),     # W2^T (resident)
                pl.BlockSpec((2, c_eff), lambda i: (0, 0)),         # [b1; b2] packed
            ],
            out_specs=pl.BlockSpec((block_m, c_eff), lambda i: (i, 0)),
        ),
        compiler_params=pltpu.CompilerParams(
            dimension_semantics=("parallel",),      # megacore-shard the row axis
            vmem_limit_bytes=48 * 1024 * 1024,      # headroom under v7x's 64 MiB
        ),
        cost_estimate=cost,
    )(a2d, w1t, w2t, b_packed)

    out = out.reshape(m_pad, c)
    if m_pad != m:
        out = out[:m]
    return out.reshape(orig_shape)


if __name__ == "__main__":
    # Small shapes consistent with the module: (*, N_res, c)
    batch, n_res, c = 2, 8, 32
    key = jax.random.PRNGKey(0)
    k_a, k_w1, k_b1, k_w2, k_b2 = jax.random.split(key, 5)

    a = jax.random.normal(k_a, (batch, n_res, c), dtype=jnp.float32)

    # Deterministic param init mimicking nn.Linear default (uniform +/- 1/sqrt(c)).
    bound = 1.0 / float(c) ** 0.5
    w1 = jax.random.uniform(k_w1, (c, c), jnp.float32, -bound, bound)
    b1 = jax.random.uniform(k_b1, (c,), jnp.float32, -bound, bound)
    w2 = jax.random.uniform(k_w2, (c, c), jnp.float32, -bound, bound)
    b2 = jax.random.uniform(k_b2, (c,), jnp.float32, -bound, bound)

    out = jax.block_until_ready(angle_resnet_layer(a, w1, b1, w2, b2))

    # f32 reference at HIGHEST matmul precision (plain XLA f32 dots on TPU
    # default to bf16 passes; the Pallas kernel performs true f32 MXU matmuls).
    hp = jax.lax.Precision.HIGHEST
    x = jnp.maximum(a, 0.0).reshape(-1, c)
    h = jnp.maximum(jnp.dot(x, w1.T, precision=hp) + b1, 0.0)
    ref = a + (jnp.dot(h, w2.T, precision=hp) + b2).reshape(a.shape)

    assert out.shape == a.shape and out.dtype == a.dtype
    assert jnp.allclose(out, ref, atol=1e-4, rtol=1e-4), "mismatch vs reference"

    print("KERNEL_OK")
</pallas_src>

<mosaic_0001>
module attributes {stable_mosaic.version = 11 : i64} {
  func.func @_angle_resnet_kernel(%arg0: i32, %arg1: memref<8x128xf32, #tpu.memory_space<vmem>>, %arg2: memref<128x128xf32, #tpu.memory_space<vmem>>, %arg3: memref<128x128xf32, #tpu.memory_space<vmem>>, %arg4: memref<2x128xf32, #tpu.memory_space<vmem>>, %arg5: memref<8x128xf32, #tpu.memory_space<vmem>>) attributes {dimension_semantics = [#tpu.dimension_semantics<parallel>], iteration_bounds = array<i64: 2>, scalar_prefetch = 0 : i64, scratch_operands = 0 : i64, tpu.core_type = #tpu.core_type<tc>, window_params = [{transform_indices = @transform_0, window_bounds = array<i64: 8, 128>}, {pipeline_mode = #tpu.pipeline_mode<synchronous>, transform_indices = @transform_1, window_bounds = array<i64: 128, 128>}, {pipeline_mode = #tpu.pipeline_mode<synchronous>, transform_indices = @transform_2, window_bounds = array<i64: 128, 128>}, {pipeline_mode = #tpu.pipeline_mode<synchronous>, transform_indices = @transform_3, window_bounds = array<i64: 2, 128>}, {transform_indices = @transform_4, window_bounds = array<i64: 8, 128>}]} {
    %c0 = arith.constant 0 : index
    %c0_0 = arith.constant 0 : index
    %0 = vector.load %arg1[%c0, %c0_0] : memref<8x128xf32, #tpu.memory_space<vmem>>, vector<8x128xf32>
    %cst = arith.constant 0.000000e+00 : f32
    %1 = vector.broadcast %cst : f32 to vector<8x128xf32>
    %2 = arith.maximumf %0, %1 : vector<8x128xf32>
    %c0_1 = arith.constant 0 : index
    %c0_2 = arith.constant 0 : index
    %3 = vector.load %arg2[%c0_1, %c0_2] : memref<128x128xf32, #tpu.memory_space<vmem>>, vector<128x128xf32>
    %cst_3 = arith.constant dense<0.000000e+00> : vector<8x128xf32>
    %4 = tpu.matmul %2, %3, %cst_3 {dimension_numbers = #tpu.dot_dimension_numbers<[1], [0], [0], [1], [0, 0, 1, 1], [], []>} : vector<8x128xf32>, vector<128x128xf32>, vector<8x128xf32> -> vector<8x128xf32>
    %c0_4 = arith.constant 0 : index
    %c0_5 = arith.constant 0 : index
    %5 = vector.load %arg4[%c0_4, %c0_5] : memref<2x128xf32, #tpu.memory_space<vmem>>, vector<1x128xf32>
    %6 = vector.broadcast %5 : vector<1x128xf32> to vector<8x128xf32>
    %7 = arith.addf %4, %6 : vector<8x128xf32>
    %cst_6 = arith.constant 0.000000e+00 : f32
    %8 = vector.broadcast %cst_6 : f32 to vector<8x128xf32>
    %9 = arith.maximumf %7, %8 : vector<8x128xf32>
    %c0_7 = arith.constant 0 : index
    %c0_8 = arith.constant 0 : index
    %10 = vector.load %arg3[%c0_7, %c0_8] : memref<128x128xf32, #tpu.memory_space<vmem>>, vector<128x128xf32>
    %cst_9 = arith.constant dense<0.000000e+00> : vector<8x128xf32>
    %11 = tpu.matmul %9, %10, %cst_9 {dimension_numbers = #tpu.dot_dimension_numbers<[1], [0], [0], [1], [0, 0, 1, 1], [], []>} : vector<8x128xf32>, vector<128x128xf32>, vector<8x128xf32> -> vector<8x128xf32>
    %c1 = arith.constant 1 : index
    %c0_10 = arith.constant 0 : index
    %12 = vector.load %arg4[%c1, %c0_10] : memref<2x128xf32, #tpu.memory_space<vmem>>, vector<1x128xf32>
    %13 = vector.broadcast %12 : vector<1x128xf32> to vector<8x128xf32>
    %14 = arith.addf %11, %13 : vector<8x128xf32>
    %15 = arith.addf %0, %14 : vector<8x128xf32>
    %c0_11 = arith.constant 0 : index
    %c0_12 = arith.constant 0 : index
    %16 = vector.load %arg5[%c0_11, %c0_12] : memref<8x128xf32, #tpu.memory_space<vmem>>, vector<8x128xf32>
    tpu.vector_store %arg5[%c0_11, %c0_12], %15 {strides = array<i32>} : memref<8x128xf32, #tpu.memory_space<vmem>>, vector<8x128xf32>,
    return
  }
  func.func @transform_0(%arg0: i32) -> (i32, i32) {
    %c0_i32 = arith.constant 0 : i32
    %c0_i32_0 = arith.constant 0 : i32
    return %arg0, %c0_i32 : i32, i32
  }
  func.func @transform_1(%arg0: i32) -> (i32, i32) {
    %c0_i32 = arith.constant 0 : i32
    %c0_i32_0 = arith.constant 0 : i32
    %c0_i32_1 = arith.constant 0 : i32
    return %c0_i32, %c0_i32_0 : i32, i32
  }
  func.func @transform_2(%arg0: i32) -> (i32, i32) {
    %c0_i32 = arith.constant 0 : i32
    %c0_i32_0 = arith.constant 0 : i32
    %c0_i32_1 = arith.constant 0 : i32
    return %c0_i32, %c0_i32_0 : i32, i32
  }
  func.func @transform_3(%arg0: i32) -> (i32, i32) {
    %c0_i32 = arith.constant 0 : i32
    %c0_i32_0 = arith.constant 0 : i32
    %c0_i32_1 = arith.constant 0 : i32
    return %c0_i32, %c0_i32_0 : i32, i32
  }
  func.func @transform_4(%arg0: i32) -> (i32, i32) {
    %c0_i32 = arith.constant 0 : i32
    %c0_i32_0 = arith.constant 0 : i32
    return %arg0, %c0_i32 : i32, i32
  }
}

</mosaic_0001>

<bundles_post_ra>
// kernel: tpu_custom_call.1
= control target key start
LH: loop header
LB: loop body
LE: loop exit
PB: predicated region body
PF: predicated region fallthrough
CT: control target
= control target key end

     0   :  { %9 = vsyncpa [#allocation3], 0  ;;  %s1120_s0 = inlined_call_operand.hbm [shape: f32[16,128], index: 0, kind: input, shape index: {}]   ;;  %s1121_s1 = inlined_call_operand.hbm [shape: f32[128,128], index: 1, kind: input, shape index: {}]   ;;  %s1122_s2 = inlined_call_operand.hbm [shape: f32[128,128], index: 2, kind: input, shape index: {}]   ;;  %s1123_s3 = inlined_call_operand.vmem [shape: f32[2,128], index: 3, kind: input, shape index: {}]   ;;  %s1124_s4 = inlined_call_operand.hbm [shape: f32[16,128], index: 4, kind: output, shape index: {}]  }
   0x1   :  { %11 = vsyncpa [#allocation3 + $0x1], 0 }
   0x2   :  { %12 = vsyncpa [#allocation6], 0 }
   0x3   :  { %13 = vsyncpa [#allocation4], 0 }
   0x4   :  { %15 = vsyncpa [#allocation4 + $0x1], 0  ;;  %s908_s15 = smov 0   ;;  %s910_s16 = smov 0  }
   0x5   :  { %s912_s17 = smov 0   ;;  %s914_s18 = smov 0  }
   0x6 LB: > { %s929_s19 = sadd.s32 4294967295, %s873_s18   ;;  %s532_s20 = sadd.s32 4294967294, %s873_s18   ;;  %s873_s18 = sphi %s914_s18, %s1146_s18   ;;  %s869_s17 = sphi %s912_s17, %s1145_s17   ;;  %s865_s16 = sphi %s910_s16, %s1144_s16   ;;  %s861_s15 = sphi %s908_s15, %s1143_s15  }
   0x7   : > { %p41_p0 = scmp.ne.s32.totalorder %s865_s16, %s861_s15  ;;  %p1125_p1 = scmp.eq.s32.totalorder %s929_s19, 0 }
   0x8   : > { %p134_p3 = scmp.eq.s32.totalorder %s532_s20, 1  ;;  %p533_p5 = scmp.ge.s32.totalorder %s873_s18, 1 }
   0x9   : > { %p938_p4 = por %p1125_p1, %p41_p0  ;;  %p141_p7 = scmp.lt.s32.totalorder %s873_s18, 3 }
   0xa   : > { %p943_p6 = por %p134_p3, %p41_p0  ;;  %s875_s24 = smov [#allocation5]  }
   0xb   : > { %s1129_s21 = scalar_select %p938_p4, 1, 0 }
   0xc   : > { %s1130_s22 = scalar_select %p943_p6, 1, 0 }
   0xd   : > { %p948_p8 = pnand %p533_p5, %p141_p7  ;;  %s153_s25 = sshll.u32 %s875_s24, 4  ;;  %s154_s25 = int_to_ptr.vmem [resolvable:$true] %s153_s25 }
   0xe   : > { %s876_s27 = smov [#allocation7]   ;;  %s736_s29 = scalar_lea.vmem %s154_s25, 2048 }
   0xf   : > { %s1131_s23 = scalar_select %p948_p8, 1, 0 }
  0x10   : > { %p666_p9 = pneg %p948_p8  ;;  %s166_s28 = sshll.u32 %s876_s27, 4  ;;  %s167_s28 = int_to_ptr.vmem [resolvable:$true] %s166_s28 }
  0x11   : > { %p737_p13 = scmp.ne.s32.totalorder %s154_s25, %s736_s29  ;;  %p744_p5 = scmp.lt.s32.totalorder %s154_s25, %s154_s25 }
  0x12   : > { %p957_p11 = pnand %p666_p9, %p1125_p1  ;;  %p745_p7 = scmp.lt.s32.totalorder %s736_s29, %s736_s29 }
  0x14   : > { %p727_p12 = pneg %p957_p11  ;;  %p746_p10 = por %p745_p7, %p744_p5 }
  0x16   : > { %p739_p0 = pnand %p737_p13, %p727_p12 }
  0x18   : > { %p740_p3 = pneg %p739_p0 }
  0x1a   : > { %p747_p9 = pnand %p746_p10, %p740_p3 }
  0x1c   : > { %750 = shalt.err (!%p747_p9)
}
  0x1d   : > { %s877_s30 = smov 128   ;;  %s878_s5 = smov 8  }
  0x1e   : > { %669 = dma.hbm_to_vmem [thread:$0]  (!%p957_p11), %s1121_s1, 2048, %s154_s25, [#allocation6], %s877_s30, %s877_s30, %s878_s5  }
  0x1f   : > { %s762_s8 = scalar_lea.vmem %s167_s28, 2048  ;;  %p770_p2 = scmp.lt.s32.totalorder %s167_s28, %s167_s28 }
  0x20   : > { %p763_p1 = scmp.ne.s32.totalorder %s167_s28, %s762_s8  ;;  %p771_p6 = scmp.lt.s32.totalorder %s762_s8, %s762_s8 }
  0x22   : > { %p765_p13 = pnand %p763_p1, %p727_p12  ;;  %p772_p5 = por %p771_p6, %p770_p2 }
  0x24   : > { %p766_p0 = pneg %p765_p13 }
  0x26   : > { %p773_p10 = pnand %p772_p5, %p766_p0 }
  0x28   : > { %776 = shalt.err (!%p773_p10)
}
  0x29   : > { %672 = dma.hbm_to_vmem [thread:$0]  (!%p957_p11), %s1122_s2, 2048, %s167_s28, [#allocation6], %s877_s30, %s877_s30, %s878_s5  }
  0x2a   : > { %s980_s11 = sadd.s32 1, %s873_s18   ;;  %s28_s12 = sadd.s32 1, %s869_s17 }
  0x2b   : > { %s25_s13 = ssub.s32 %s873_s18, %s980_s11  ;;  %p35_p1 = scmp.ne.s32.totalorder %s869_s17, %s865_s16 }
  0x2c   : > { %p26_p2 = scmp.eq.s32.totalorder %s25_s13, 0  ;;  %p36_p6 = scmp.eq.s32.totalorder %s873_s18, 0 }
  0x2d   : > { %p1133_p12 = scmp.eq.s32.totalorder %s929_s19, 1  ;;  %p683_p7 = scmp.lt.s32.totalorder %s873_s18, 2 }
  0x2e   : > { %s996_s20 = scalar_select %p26_p2, %s869_s17, %s28_s12  }
  0x2f   : > { %p990_p3 = por %p1133_p12, %p35_p1  ;;  %p37_p9 = por %p36_p6, %p35_p1 }
  0x30   : > { %s183_s24 = sand.u32 1, %s869_s17   ;;  %s538_s26 = sshll.u32 %s873_s18, 7 }
  0x31   : > { %s1134_s14 = scalar_select %p990_p3, 1, 0 }
  0x32   : > { %s537_s25 = sshll.u32 %s183_s24, 3  ;;  %s1003_s29 = scalar_lea.hbm %s1120_s0, %s538_s26 }
  0x33   : > { %s187_s30 = scalar_lea.vmem [#allocation2], %s537_s25  ;;  %p1005_p11 = pnand %p683_p7, %p37_p9 }
  0x34   : > { %s194_s5 = sshll.u32 %s187_s30, 4  ;;  %s184_s7 = scalar_lea.sflag [#allocation3], %s183_s24  ;;  %s195_s5 = int_to_ptr.vmem [resolvable:$true] %s194_s5 }
  0x35   : > { %s777_s8 = scalar_lea.hbm %s1003_s29, 128  ;;  %p779_p0 = pneg %p1005_p11 }
  0x36   : > { %p778_p13 = scmp.ne.s32.totalorder %s1003_s29, %s777_s8  ;;  %s782_s12 = scalar_lea.hbm %s1120_s0, 256 }
  0x37   : > { %p783_p1 = scmp.lt.s32.totalorder %s1003_s29, %s1120_s0  ;;  %p784_p2 = scmp.lt.s32.totalorder %s782_s12, %s777_s8 }
  0x38   : > { %p780_p5 = pnand %p779_p0, %p778_p13 }
  0x39   : > { %p785_p6 = por %p784_p2, %p783_p1 }
  0x3a   : > { %p781_p10 = pneg %p780_p5 }
  0x3c   : > { %p786_p12 = pnand %p785_p6, %p781_p10 }
  0x3e   : > { %789 = shalt.err (!%p786_p12)
}
  0x3f   : > { %s790_s26 = scalar_lea.vmem %s195_s5, 128  ;;  %s879_s24 = smov [#allocation2]  }
  0x40   : > { %p791_p7 = scmp.ne.s32.totalorder %s195_s5, %s790_s26  ;;  %s795_s27 = sshll.u32 %s879_s24, 4  ;;  %s796_s27 = int_to_ptr.vmem [resolvable:$false] %s795_s27 }
  0x41   : > { %s797_s28 = scalar_lea.vmem %s796_s27, 256  ;;  %p798_p13 = scmp.lt.s32.totalorder %s195_s5, %s796_s27 }
  0x42   : > { %p793_p9 = pnand %p791_p7, %p779_p0  ;;  %p799_p5 = scmp.lt.s32.totalorder %s797_s28, %s790_s26 }
  0x44   : > { %p794_p3 = pneg %p793_p9  ;;  %p800_p4 = por %p799_p5, %p798_p13 }
  0x46   : > { %p801_p8 = pnand %p800_p4, %p794_p3 }
  0x48   : > { %804 = shalt.err (!%p801_p8)
}
  0x49   : > { %676 = dma.hbm_to_vmem [thread:$0]  (!%p1005_p11), %s1003_s29, 128, %s195_s5, %s184_s7  }
  0x4a   : > { %p1136_p10 = scmp.ne.s32.totalorder %s1131_s23, 0 }
  0x4b   : > { %s1026_s30 = sand.u32 (!%p1136_p10), 1, %s865_s16   ;;  %p1137_p4 = scmp.ne.s32.totalorder (!%p1136_p10), %s1129_s21, 0 }
  0x4c   : > { %203 = sbr.rel (%p1136_p10) target bundleno = 526 (0x20e), region = 36  ;;  %s540_s8 = sshll.u32 (!%p1136_p10), %s1026_s30, 3 }
  0x4d   : > { %s206_s9 = scalar_lea.sflag (!%p1136_p10), [#allocation3], %s1026_s30  ;;  %s1032_s10 = scalar_lea.vmem (!%p1136_p10), [#allocation2], %s540_s8 }
  0x51   : > { %848 = dma.done.wait (%p1137_p4), %s206_s9, 128  }
  0x52   : > { %850 = vsyncadd (%p1137_p4), %s206_s9, 4294967168  ;;  %p1138_p8 = scmp.eq.s32.totalorder %s929_s19, 0 }
  0x54   : > { %852 = dma.done.wait (%p1138_p8), [#allocation6], 4096   ;;  %p1139_p3 = pmov %p1138_p8 }
  0x55   : > { %v880_v0 = vmov 0.0   ;;  %vm881_vm0 = vmmov 0   ;;  %v259_v1 = vld [vmem:[#allocation5 + $0x78] sm:$0xff]  ;;  %v258_v2 = vld [vmem:[#allocation5 + $0x70] sm:$0xff]  ;;  %v257_v3 = vld [vmem:[#allocation5 + $0x68] sm:$0xff]  ;;  %s547_s6 = sshll.u32 %s929_s19, 7 }
  0x56   : > { %854 = vsyncadd (%p1139_p3), [#allocation6], 4294963200  ;;  %584 = vmatprep.subr.mxu0 %v880_v0  ;;  %616 = vmatprep.mubr.msk.f32.mxu0 %vm881_vm0, %v880_v0  ;;  %v256_v4 = vld [vmem:[#allocation5 + $0x60] sm:$0xff]  ;;  %v351_v5 = vld [vmem:[#allocation7 + $0x78] sm:$0xff]  ;;  %s241_s7 = scalar_lea.vmem [#allocation8], %s540_s8  ;;  %s441_s26 = scalar_lea.hbm %s1124_s4, %s547_s6 }
  0x57   : > { %619 = vmatprep.subr.mxu1 %v880_v0  ;;  %651 = vmatprep.mubr.msk.f32.mxu1 %vm881_vm0, %v880_v0  ;;  %v255_v6 = vld [vmem:[#allocation5 + $0x58] sm:$0xff]  ;;  %v350_v7 = vld [vmem:[#allocation7 + $0x70] sm:$0xff]  ;;  %v349_v8 = vld [vmem:[#allocation7 + $0x68] sm:$0xff]  ;;  %s443_s12 = sshll.u32 %s241_s7, 4  ;;  %s430_s24 = scalar_lea.sflag [#allocation4], %s1026_s30  ;;  %s444_s12 = int_to_ptr.vmem [resolvable:$true] %s443_s12 }
  0x58   : > { %585 = vmatpush3.msra.mxu0 %v259_v1  ;;  %620 = vmatpush3.msra.mxu1 %v351_v5  ;;  %v254_v9 = vld [vmem:[#allocation5 + $0x50] sm:$0xff]  ;;  %v348_v10 = vld [vmem:[#allocation7 + $0x60] sm:$0xff]  ;;  %v253_v11 = vld [vmem:[#allocation5 + $0x48] sm:$0xff]  ;;  %s805_s27 = scalar_lea.vmem %s444_s12, 128  ;;  %p1140_p0 = scmp.ne.s32.totalorder %s1134_s14, 0 }
  0x59   : > { %586 = vmatprep.subr.mxu0 %v880_v0  ;;  %621 = vmatprep.subr.mxu1 %v880_v0  ;;  %v347_v12 = vld [vmem:[#allocation7 + $0x58] sm:$0xff]  ;;  %v252_v13 = vld [vmem:[#allocation5 + $0x40] sm:$0xff]  ;;  %v346_v14 = vld [vmem:[#allocation7 + $0x50] sm:$0xff]  ;;  %p806_p11 = scmp.ne.s32.totalorder %s444_s12, %s805_s27  ;;  %s882_s28 = smov [#allocation8]  }
  0x5a   : > { %587 = vmatpush3.msra.mxu0 %v258_v2  ;;  %622 = vmatpush3.msra.mxu1 %v350_v7  ;;  %v251_v15 = vld [vmem:[#allocation5 + $0x38] sm:$0xff]  ;;  %v345_v16 = vld [vmem:[#allocation7 + $0x48] sm:$0xff]  ;;  %v250_v17 = vld [vmem:[#allocation5 + $0x30] sm:$0xff]  ;;  %s809_s19 = sshll.u32 %s882_s28, 4  ;;  %s810_s19 = int_to_ptr.vmem [resolvable:$false] %s809_s19 }
  0x5b   : > { %588 = vmatprep.subr.mxu0 %v880_v0  ;;  %623 = vmatprep.subr.mxu1 %v880_v0  ;;  %v344_v18 = vld [vmem:[#allocation7 + $0x40] sm:$0xff]  ;;  %v249_v19 = vld [vmem:[#allocation5 + $0x28] sm:$0xff]  ;;  %v343_v20 = vld [vmem:[#allocation7 + $0x38] sm:$0xff]  ;;  %p807_p1 = pnand %p806_p11, %p1140_p0  ;;  %s811_s8 = scalar_lea.vmem %s810_s19, 256 }
  0x5c   : > { %589 = vmatpush3.msra.mxu0 %v257_v3  ;;  %624 = vmatpush3.msra.mxu1 %v349_v8  ;;  %v248_v21 = vld [vmem:[#allocation5 + $0x20] sm:$0xff]  ;;  %v342_v22 = vld [vmem:[#allocation7 + $0x30] sm:$0xff]  ;;  %v247_v23 = vld [vmem:[#allocation5 + $0x18] sm:$0xff]  ;;  %p812_p6 = scmp.lt.s32.totalorder %s444_s12, %s810_s19  ;;  %p813_p12 = scmp.lt.s32.totalorder %s811_s8, %s805_s27 }
  0x5d   : > { %590 = vmatprep.subr.mxu0 %v880_v0  ;;  %625 = vmatprep.subr.mxu1 %v880_v0  ;;  %v341_v24 = vld [vmem:[#allocation7 + $0x28] sm:$0xff]  ;;  %v246_v25 = vld [vmem:[#allocation5 + $0x10] sm:$0xff]  ;;  %v340_v27 = vld [vmem:[#allocation7 + $0x20] sm:$0xff]  ;;  %p808_p2 = pneg %p807_p1 }
  0x5e   : > { %591 = vmatpush3.msra.mxu0 %v256_v4  ;;  %626 = vmatpush3.msra.mxu1 %v348_v10  ;;  %v242_v26 = vld [vmem:[%s1032_s10] sm:$0xff]  ;;  %v245_v28 = vld [vmem:[#allocation5 + $0x8] sm:$0xff]  ;;  %v244_v30 = vld [vmem:[#allocation5] sm:$0xff]  ;;  %p814_p7 = por %p813_p12, %p812_p6 }
  0x5f   : > { %592 = vmatprep.subr.mxu0 %v880_v0  ;;  %627 = vmatprep.subr.mxu1 %v880_v0  ;;  %v339_v29 = vld [vmem:[#allocation7 + $0x18] sm:$0xff]  ;;  %v243_v31 = vmax.f32 %v242_v26, 0.0  ;;  %v338_v32 = vld [vmem:[#allocation7 + $0x10] sm:$0xff]  ;;  %v337_v33 = vld [vmem:[#allocation7 + $0x8] sm:$0xff] }
  0x60   : > { %593 = vmatpush3.msra.mxu0 %v255_v6  ;;  %628 = vmatpush3.msra.mxu1 %v347_v12  ;;  %v336_v34 = vld [vmem:[#allocation7] sm:$0xff]  ;;  %v544_v35 = vld [vmem:[%s1123_s3] ss:$0 sm:$0xff]  ;;  %v545_v40 = vld [vmem:[%s1123_s3 + $0x1] ss:$0 sm:$0xff]  ;;  %p815_p9 = pnand %p814_p7, %p808_p2 }
  0x61   : > { %594 = vmatprep.subr.mxu0 %v880_v0  ;;  %629 = vmatprep.subr.mxu1 %v880_v0 }
  0x62   : > { %595 = vmatpush3.msra.mxu0 %v254_v9  ;;  %630 = vmatpush3.msra.mxu1 %v346_v14 }
  0x63   : > { %596 = vmatprep.subr.mxu0 %v880_v0  ;;  %631 = vmatprep.subr.mxu1 %v880_v0 }
  0x64   : > { %597 = vmatpush3.msra.mxu0 %v253_v11  ;;  %632 = vmatpush3.msra.mxu1 %v345_v16 }
  0x65   : > { %598 = vmatprep.subr.mxu0 %v880_v0  ;;  %633 = vmatprep.subr.mxu1 %v880_v0 }
  0x66   : > { %599 = vmatpush3.msra.mxu0 %v252_v13  ;;  %634 = vmatpush3.msra.mxu1 %v344_v18 }
  0x67   : > { %600 = vmatprep.subr.mxu0 %v880_v0  ;;  %635 = vmatprep.subr.mxu1 %v880_v0 }
  0x68   : > { %601 = vmatpush3.msra.mxu0 %v251_v15  ;;  %636 = vmatpush3.msra.mxu1 %v343_v20 }
  0x69   : > { %602 = vmatprep.subr.mxu0 %v880_v0  ;;  %637 = vmatprep.subr.mxu1 %v880_v0 }
  0x6a   : > { %603 = vmatpush3.msra.mxu0 %v250_v17  ;;  %638 = vmatpush3.msra.mxu1 %v342_v22 }
  0x6b   : > { %604 = vmatprep.subr.mxu0 %v880_v0  ;;  %639 = vmatprep.subr.mxu1 %v880_v0 }
  0x6c   : > { %605 = vmatpush3.msra.mxu0 %v249_v19  ;;  %640 = vmatpush3.msra.mxu1 %v341_v24 }
  0x6d   : > { %606 = vmatprep.subr.mxu0 %v880_v0  ;;  %641 = vmatprep.subr.mxu1 %v880_v0 }
  0x6e   : > { %607 = vmatpush3.msra.mxu0 %v248_v21  ;;  %642 = vmatpush3.msra.mxu1 %v340_v27 }
  0x6f   : > { %608 = vmatprep.subr.mxu0 %v880_v0  ;;  %643 = vmatprep.subr.mxu1 %v880_v0 }
  0x70   : > { %609 = vmatpush3.msra.mxu0 %v247_v23  ;;  %644 = vmatpush3.msra.mxu1 %v339_v29 }
  0x71   : > { %610 = vmatprep.subr.mxu0 %v880_v0  ;;  %645 = vmatprep.subr.mxu1 %v880_v0 }
  0x72   : > { %611 = vmatpush3.msra.mxu0 %v246_v25  ;;  %646 = vmatpush3.msra.mxu1 %v338_v32 }
  0x73   : > { %612 = vmatprep.subr.mxu0 %v880_v0  ;;  %647 = vmatprep.subr.mxu1 %v880_v0 }
  0x74   : > { %613 = vmatpush3.msra.mxu0 %v245_v28  ;;  %648 = vmatpush3.msra.mxu1 %v337_v33 }
  0x75   : > { %614 = vmatprep.subr.mxu0 %v880_v0  ;;  %649 = vmatprep.subr.mxu1 %v880_v0 }
  0x76   : > { %615 = vmatpush3.msra.mxu0 %v244_v30  ;;  %650 = vmatpush3.msra.mxu1 %v336_v34 }
  0x77   : > { %617 = vmatmul.mubr.f32.vlgmr.msra.gmra.mxu0 %v243_v31 }
 0x137   : > { %v331_v36 = vpop.f32.mrf.mxu0 }
 0x138   : > { %v332_v37 = vadd.f32 %v544_v35, %v331_v36 }
 0x139   : > { %v618_v38 = vpop.f32.mrf.mxu0 }
 0x13a   : > { %v335_v39 = vmax.f32 %v332_v37, 0.0 }
 0x13c   : > { %652 = vmatmul.mubr.f32.vlgmr.msra.gmra.mxu1 %v335_v39 }
 0x1fc   : > { %v423_v41 = vpop.f32.mrf.mxu1 }
 0x1fd   : > { %v424_v42 = vadd.f32 %v545_v40, %v423_v41 }
 0x1fe   : > { %v653_v43 = vpop.f32.mrf.mxu1 }
 0x1ff   : > { %v427_v44 = vadd.f32 %v424_v42, %v242_v26 }
 0x201   : > { %428 = vst [vmem:[%s241_s7] sm:$0xff] %v427_v44 }
 0x202   : > { %818 = shalt.err (!%p815_p9)
}
 0x203   : > { %s819_s9 = scalar_lea.hbm %s441_s26, 128  ;;  %s823_s21 = scalar_lea.hbm %s1124_s4, 256 }
 0x204   : > { %p820_p13 = scmp.ne.s32.totalorder %s441_s26, %s819_s9  ;;  %p824_p4 = scmp.lt.s32.totalorder %s441_s26, %s1124_s4 }
 0x205   : > { %p825_p8 = scmp.lt.s32.totalorder %s823_s21, %s819_s9 }
 0x206   : > { %p821_p5 = pnand %p820_p13, %p1140_p0 }
 0x207   : > { %p826_p3 = por %p825_p8, %p824_p4 }
 0x208   : > { %p822_p10 = pneg %p821_p5 }
 0x20a   : > { %p827_p11 = pnand %p826_p3, %p822_p10 }
 0x20c   : > { %830 = shalt.err (!%p827_p11)
}
 0x20d   : > { %664 = dma.vmem_to_hbm [thread:$0]  (%p1140_p0), %s444_s12, 128, %s441_s26, %s430_s24  }
 0x20e PF: > { %s455_s5 = sand.u32 1, %s861_s15   ;;  %p1141_p1 = scmp.ne.s32.totalorder %s1130_s22, 0 }
 0x20f   : > { %p1142_p2 = scmp.ge.s32.totalorder %s873_s18, 2  ;;  %s456_s6 = scalar_lea.sflag [#allocation4], %s455_s5 }
 0x211   : > { %p678_p6 = pnand %p1142_p2, %p1141_p1 }
 0x213   : > { %p679_p12 = pneg %p678_p6 }
 0x215   : > { %856 = dma.done.wait (%p679_p12), %s456_s6, 128  }
 0x216   : > { %858 = vsyncadd (%p679_p12), %s456_s6, 4294967168  ;;  %p18_p7 = scmp.ge.s32.totalorder %s980_s11, 4   ;;  %s1143_s15 = smov %s865_s16 }
 0x217   : > { %s1144_s16 = smov %s869_s17  ;;  %s1145_s17 = smov %s996_s20 }
 0x218   : > { %s1146_s18 = smov %s980_s11  ;;  %20 = sbr.rel (!%p18_p7) target bundleno = 6 (0x6), region = 89 }
 0x21d   :  { %461 = vsyncpa [#allocation3], 1 }
 0x21e   :  { %463 = vsyncpa [#allocation3 + $0x1], 1 }
 0x21f   :  { %464 = vsyncpa [#allocation6], 1 }
 0x220   :  { %465 = vsyncpa [#allocation4], 1 }
 0x221   :  { %467 = vsyncpa [#allocation4 + $0x1], 1 }

</bundles_post_ra>
